<compile_context>
chip_gen: v7x
topology: tpu7x:2x2x1
jax: 0.10.0
libtpu: 0.0.40
codegen_flags: <defaults>
</compile_context>

<pallas_src>
import functools

import jax
import jax.numpy as jnp
from jax.experimental import pallas as pl
from jax.experimental.pallas import tpu as pltpu


def _round_up(x: int, m: int) -> int:
    return ((x + m - 1) // m) * m


def central_critic_kernel(s_ref, a_ref,
                          w1s_ref, w1a_ref, b1_ref,
                          w2_ref, b2_ref,
                          w3_ref, b3_ref,
                          w4r_ref, b4_ref,
                          o_ref):
    """One batch tile of the 4-layer MLP, fully in VMEM.

    s_ref: (TM, obs_dim) bf16, a_ref: (TM, act_dim) bf16, o_ref: (1, TM) f32.
    Weights are bf16 [in, out]; w4r is the last layer pre-transposed to
    (1, H); biases are f32; b4 is a (1,1) scalar in SMEM.
    """
    # Layer 1: split-K bf16 matmuls with f32 accumulation (replaces the concat).
    h = jnp.dot(s_ref[...], w1s_ref[...], preferred_element_type=jnp.float32)
    h = h + jnp.dot(a_ref[...], w1a_ref[...], preferred_element_type=jnp.float32)
    h = jnp.maximum(h + b1_ref[...], 0.0).astype(jnp.bfloat16)

    # Layers 2 and 3 (bf16 operands, f32 accumulate, ReLU, re-cast to bf16).
    h = jnp.maximum(
        jnp.dot(h, w2_ref[...], preferred_element_type=jnp.float32) + b2_ref[...],
        0.0).astype(jnp.bfloat16)
    h = jnp.maximum(
        jnp.dot(h, w3_ref[...], preferred_element_type=jnp.float32) + b3_ref[...],
        0.0).astype(jnp.bfloat16)

    # Layer 4: (1,H) x (TM,H) contracted over H -> (1,TM).  Transposed
    # contraction on the MXU: no h.T materialized, lane-dense output row.
    q_row = jax.lax.dot_general(
        w4r_ref[...], h,
        dimension_numbers=(((1,), (1,)), ((), ())),
        preferred_element_type=jnp.float32)
    o_ref[...] = (q_row + b4_ref[0, 0]).astype(o_ref.dtype)


@functools.partial(jax.jit, static_argnames=("tm",))
def central_critic_forward(state, action, params, tm: int = 2048):
    """state: [B, obs_dim] f32, action: [B, act_dim] f32 -> q: [B, 1] f32."""
    assert tm % 128 == 0, "batch tile must be a multiple of 128"
    B, obs_dim = state.shape
    _, act_dim = action.shape
    w1, b1, w2, b2, w3, b3, w4, b4 = params
    hidden = w1.shape[1]

    # bf16 MXU operands; biases stay f32 (added to the f32 accumulator).
    w1s = w1[:obs_dim].astype(jnp.bfloat16)      # (obs_dim, hidden)
    w1a = w1[obs_dim:].astype(jnp.bfloat16)      # (act_dim, hidden)
    w2b = w2.astype(jnp.bfloat16)
    w3b = w3.astype(jnp.bfloat16)
    w4r = w4.T.astype(jnp.bfloat16)              # (1, hidden)
    b1f = b1.astype(jnp.float32)
    b2f = b2.astype(jnp.float32)
    b3f = b3.astype(jnp.float32)
    b4s = b4.reshape(1, 1).astype(jnp.float32)   # scalar -> SMEM

    state_b = state.astype(jnp.bfloat16)
    action_b = action.astype(jnp.bfloat16)

    # Batch tile: >=128 (lane-dense unmasked output stores), <= tm, and aim
    # for >=4 grid steps at large B so the "parallel" axis can shard across
    # v7x's two TensorCores and the input DMA pipelines against compute.
    tm_eff = min(tm, max(128, _round_up(pl.cdiv(B, 4), 128)))
    n_tiles = pl.cdiv(B, tm_eff)
    b_pad = n_tiles * tm_eff
    if b_pad != B:
        state_b = jnp.pad(state_b, ((0, b_pad - B), (0, 0)))
        action_b = jnp.pad(action_b, ((0, b_pad - B), (0, 0)))

    def resident(shape):
        # Same block every grid step: fetched once, single-buffered in VMEM.
        return pl.BlockSpec(shape, lambda i: (0, 0),
                            pipeline_mode=pl.Buffered(buffer_count=1))

    out = pl.pallas_call(
        central_critic_kernel,
        out_shape=jax.ShapeDtypeStruct((1, b_pad), jnp.float32),
        grid=(n_tiles,),
        in_specs=[
            pl.BlockSpec((tm_eff, obs_dim), lambda i: (i, 0)),   # state tile
            pl.BlockSpec((tm_eff, act_dim), lambda i: (i, 0)),   # action tile
            resident((obs_dim, hidden)),                         # w1 (state part)
            resident((act_dim, hidden)),                         # w1 (action part)
            resident((1, hidden)),                               # b1
            resident((hidden, hidden)),                          # w2
            resident((1, hidden)),                               # b2
            resident((hidden, hidden)),                          # w3
            resident((1, hidden)),                               # b3
            resident((1, hidden)),                               # w4^T
            pl.BlockSpec(memory_space=pltpu.MemorySpace.SMEM),   # b4 scalar
        ],
        out_specs=pl.BlockSpec((1, tm_eff), lambda i: (0, i)),   # lane-dense row
        compiler_params=pltpu.CompilerParams(
            dimension_semantics=("parallel",)),
    )(state_b, action_b, w1s, w1a, b1f, w2b, b2f, w3b, b3f, w4r, b4s)

    # (1, b_pad) lane-major == batch order; drop padding, restore [B, 1].
    return out.reshape(b_pad, 1)[:B]


def init_params(obs_dim, act_dim, hidden_dim, key):
    """Deterministic synthetic weights (kernel layout [in, out]); biases [1, out]."""
    d_in = obs_dim + act_dim
    ks = jax.random.split(key, 8)

    def lin(kw, kb, fan_in, fan_out):
        w = (jax.random.normal(kw, (fan_in, fan_out), jnp.float32)
             / jnp.sqrt(jnp.float32(fan_in)))
        b = 0.01 * jax.random.normal(kb, (1, fan_out), jnp.float32)
        return w, b

    w1, b1 = lin(ks[0], ks[1], d_in, hidden_dim)
    w2, b2 = lin(ks[2], ks[3], hidden_dim, hidden_dim)
    w3, b3 = lin(ks[4], ks[5], hidden_dim, hidden_dim)
    w4, b4 = lin(ks[6], ks[7], hidden_dim, 1)
    return (w1, b1, w2, b2, w3, b3, w4, b4)


def reference_forward(state, action, params):
    """Pure-JAX f32 reference mirroring the PyTorch module exactly."""
    w1, b1, w2, b2, w3, b3, w4, b4 = params
    x = jnp.concatenate([state, action], axis=1)
    h = jnp.maximum(x @ w1 + b1, 0.0)
    h = jnp.maximum(h @ w2 + b2, 0.0)
    h = jnp.maximum(h @ w3 + b3, 0.0)
    return h @ w4 + b4


if __name__ == "__main__":
    # NOTE: torch.optim.Adam / training step is not part of the forward pass
    # and is not translated.
    B, OBS_DIM, ACT_DIM, HIDDEN = 8, 24, 8, 128
    # bf16 MXU operands (f32 accumulation) -> relaxed tolerance vs f32 reference.
    ATOL = RTOL = 5e-2

    key = jax.random.PRNGKey(0)
    k_state, k_action, k_params, k_s2, k_a2 = jax.random.split(key, 5)
    state = jax.random.normal(k_state, (B, OBS_DIM), jnp.float32)
    action = jax.random.normal(k_action, (B, ACT_DIM), jnp.float32)
    params = init_params(OBS_DIM, ACT_DIM, HIDDEN, k_params)

    q_val = jax.block_until_ready(central_critic_forward(state, action, params))
    q_ref = reference_forward(state, action, params)
    assert q_val.shape == (B, 1), q_val.shape
    err = jnp.max(jnp.abs(q_val - q_ref))
    assert jnp.allclose(q_val, q_ref, atol=ATOL, rtol=RTOL), f"mismatch: {err}"

    # Ragged batch: exercises padding + multi-tile grid + resident weights.
    B2 = 300
    state2 = jax.random.normal(k_s2, (B2, OBS_DIM), jnp.float32)
    action2 = jax.random.normal(k_a2, (B2, ACT_DIM), jnp.float32)
    q2 = jax.block_until_ready(
        central_critic_forward(state2, action2, params, tm=256))
    q2_ref = reference_forward(state2, action2, params)
    assert q2.shape == (B2, 1), q2.shape
    err2 = jnp.max(jnp.abs(q2 - q2_ref))
    assert jnp.allclose(q2, q2_ref, atol=ATOL, rtol=RTOL), f"mismatch: {err2}"

    print("KERNEL_OK")
</pallas_src>

<mosaic_0001>
module attributes {stable_mosaic.version = 11 : i64} {
  func.func @central_critic_kernel(%arg0: i32, %arg1: memref<128x24xbf16, #tpu.memory_space<vmem>>, %arg2: memref<128x8xbf16, #tpu.memory_space<vmem>>, %arg3: memref<24x128xbf16, #tpu.memory_space<vmem>>, %arg4: memref<8x128xbf16, #tpu.memory_space<vmem>>, %arg5: memref<1x128xf32, #tpu.memory_space<vmem>>, %arg6: memref<128x128xbf16, #tpu.memory_space<vmem>>, %arg7: memref<1x128xf32, #tpu.memory_space<vmem>>, %arg8: memref<128x128xbf16, #tpu.memory_space<vmem>>, %arg9: memref<1x128xf32, #tpu.memory_space<vmem>>, %arg10: memref<1x128xbf16, #tpu.memory_space<vmem>>, %arg11: memref<1x1xf32, #tpu.memory_space<smem>>, %arg12: memref<1x128xf32, #tpu.memory_space<vmem>>) attributes {dimension_semantics = [#tpu.dimension_semantics<parallel>], iteration_bounds = array<i64: 1>, scalar_prefetch = 0 : i64, scratch_operands = 0 : i64, tpu.core_type = #tpu.core_type<tc>, window_params = [{transform_indices = @transform_0, window_bounds = array<i64: 128, 24>}, {transform_indices = @transform_1, window_bounds = array<i64: 128, 8>}, {pipeline_mode = #tpu.pipeline_mode<synchronous>, transform_indices = @transform_2, window_bounds = array<i64: 24, 128>}, {pipeline_mode = #tpu.pipeline_mode<synchronous>, transform_indices = @transform_3, window_bounds = array<i64: 8, 128>}, {pipeline_mode = #tpu.pipeline_mode<synchronous>, transform_indices = @transform_4, window_bounds = array<i64: 1, 128>}, {pipeline_mode = #tpu.pipeline_mode<synchronous>, transform_indices = @transform_5, window_bounds = array<i64: 128, 128>}, {pipeline_mode = #tpu.pipeline_mode<synchronous>, transform_indices = @transform_6, window_bounds = array<i64: 1, 128>}, {pipeline_mode = #tpu.pipeline_mode<synchronous>, transform_indices = @transform_7, window_bounds = array<i64: 128, 128>}, {pipeline_mode = #tpu.pipeline_mode<synchronous>, transform_indices = @transform_8, window_bounds = array<i64: 1, 128>}, {pipeline_mode = #tpu.pipeline_mode<synchronous>, transform_indices = @transform_9, window_bounds = array<i64: 1, 128>}, {transform_indices = @transform_10, window_bounds = array<i64: 1, 1>}, {transform_indices = @transform_11, window_bounds = array<i64: 1, 128>}]} {
    %c0 = arith.constant 0 : index
    %c0_0 = arith.constant 0 : index
    %0 = vector.load %arg1[%c0, %c0_0] : memref<128x24xbf16, #tpu.memory_space<vmem>>, vector<128x24xbf16>
    %c0_1 = arith.constant 0 : index
    %c0_2 = arith.constant 0 : index
    %1 = vector.load %arg3[%c0_1, %c0_2] : memref<24x128xbf16, #tpu.memory_space<vmem>>, vector<24x128xbf16>
    %cst = arith.constant dense<0.000000e+00> : vector<128x128xf32>
    %2 = tpu.matmul %0, %1, %cst {dimension_numbers = #tpu.dot_dimension_numbers<[1], [0], [0], [1], [0, 0, 1, 1], [], []>} : vector<128x24xbf16>, vector<24x128xbf16>, vector<128x128xf32> -> vector<128x128xf32>
    %c0_3 = arith.constant 0 : index
    %c0_4 = arith.constant 0 : index
    %3 = vector.load %arg2[%c0_3, %c0_4] : memref<128x8xbf16, #tpu.memory_space<vmem>>, vector<128x8xbf16>
    %c0_5 = arith.constant 0 : index
    %c0_6 = arith.constant 0 : index
    %4 = vector.load %arg4[%c0_5, %c0_6] : memref<8x128xbf16, #tpu.memory_space<vmem>>, vector<8x128xbf16>
    %cst_7 = arith.constant dense<0.000000e+00> : vector<128x128xf32>
    %5 = tpu.matmul %3, %4, %cst_7 {dimension_numbers = #tpu.dot_dimension_numbers<[1], [0], [0], [1], [0, 0, 1, 1], [], []>} : vector<128x8xbf16>, vector<8x128xbf16>, vector<128x128xf32> -> vector<128x128xf32>
    %6 = arith.addf %2, %5 : vector<128x128xf32>
    %c0_8 = arith.constant 0 : index
    %c0_9 = arith.constant 0 : index
    %7 = vector.load %arg5[%c0_8, %c0_9] : memref<1x128xf32, #tpu.memory_space<vmem>>, vector<1x128xf32>
    %8 = vector.broadcast %7 : vector<1x128xf32> to vector<128x128xf32>
    %9 = arith.addf %6, %8 : vector<128x128xf32>
    %cst_10 = arith.constant 0.000000e+00 : f32
    %10 = vector.broadcast %cst_10 : f32 to vector<128x128xf32>
    %11 = arith.maximumf %9, %10 : vector<128x128xf32>
    %12 = arith.truncf %11 : vector<128x128xf32> to vector<128x128xbf16>
    %c0_11 = arith.constant 0 : index
    %c0_12 = arith.constant 0 : index
    %13 = vector.load %arg6[%c0_11, %c0_12] : memref<128x128xbf16, #tpu.memory_space<vmem>>, vector<128x128xbf16>
    %cst_13 = arith.constant dense<0.000000e+00> : vector<128x128xf32>
    %14 = tpu.matmul %12, %13, %cst_13 {dimension_numbers = #tpu.dot_dimension_numbers<[1], [0], [0], [1], [0, 0, 1, 1], [], []>} : vector<128x128xbf16>, vector<128x128xbf16>, vector<128x128xf32> -> vector<128x128xf32>
    %c0_14 = arith.constant 0 : index
    %c0_15 = arith.constant 0 : index
    %15 = vector.load %arg7[%c0_14, %c0_15] : memref<1x128xf32, #tpu.memory_space<vmem>>, vector<1x128xf32>
    %16 = vector.broadcast %15 : vector<1x128xf32> to vector<128x128xf32>
    %17 = arith.addf %14, %16 : vector<128x128xf32>
    %cst_16 = arith.constant 0.000000e+00 : f32
    %18 = vector.broadcast %cst_16 : f32 to vector<128x128xf32>
    %19 = arith.maximumf %17, %18 : vector<128x128xf32>
    %20 = arith.truncf %19 : vector<128x128xf32> to vector<128x128xbf16>
    %c0_17 = arith.constant 0 : index
    %c0_18 = arith.constant 0 : index
    %21 = vector.load %arg8[%c0_17, %c0_18] : memref<128x128xbf16, #tpu.memory_space<vmem>>, vector<128x128xbf16>
    %cst_19 = arith.constant dense<0.000000e+00> : vector<128x128xf32>
    %22 = tpu.matmul %20, %21, %cst_19 {dimension_numbers = #tpu.dot_dimension_numbers<[1], [0], [0], [1], [0, 0, 1, 1], [], []>} : vector<128x128xbf16>, vector<128x128xbf16>, vector<128x128xf32> -> vector<128x128xf32>
    %c0_20 = arith.constant 0 : index
    %c0_21 = arith.constant 0 : index
    %23 = vector.load %arg9[%c0_20, %c0_21] : memref<1x128xf32, #tpu.memory_space<vmem>>, vector<1x128xf32>
    %24 = vector.broadcast %23 : vector<1x128xf32> to vector<128x128xf32>
    %25 = arith.addf %22, %24 : vector<128x128xf32>
    %cst_22 = arith.constant 0.000000e+00 : f32
    %26 = vector.broadcast %cst_22 : f32 to vector<128x128xf32>
    %27 = arith.maximumf %25, %26 : vector<128x128xf32>
    %28 = arith.truncf %27 : vector<128x128xf32> to vector<128x128xbf16>
    %c0_23 = arith.constant 0 : index
    %c0_24 = arith.constant 0 : index
    %29 = vector.load %arg10[%c0_23, %c0_24] : memref<1x128xbf16, #tpu.memory_space<vmem>>, vector<1x128xbf16>
    %cst_25 = arith.constant dense<0.000000e+00> : vector<1x128xf32>
    %30 = tpu.matmul %29, %28, %cst_25 {dimension_numbers = #tpu.dot_dimension_numbers<[1], [1], [0], [0], [0, 0, 1, 0], [], []>} : vector<1x128xbf16>, vector<128x128xbf16>, vector<1x128xf32> -> vector<1x128xf32>
    %c0_26 = arith.constant 0 : index
    %c0_27 = arith.constant 0 : index
    %31 = memref.load %arg11[%c0_26, %c0_27] : memref<1x1xf32, #tpu.memory_space<smem>>
    %32 = vector.broadcast %31 : f32 to vector<1x128xf32>
    %33 = arith.addf %30, %32 : vector<1x128xf32>
    %c0_28 = arith.constant 0 : index
    %c0_29 = arith.constant 0 : index
    %34 = vector.load %arg12[%c0_28, %c0_29] : memref<1x128xf32, #tpu.memory_space<vmem>>, vector<1x128xf32>
    tpu.vector_store %arg12[%c0_28, %c0_29], %33 {strides = array<i32>} : memref<1x128xf32, #tpu.memory_space<vmem>>, vector<1x128xf32>,
    return
  }
  func.func @transform_0(%arg0: i32) -> (i32, i32) {
    %c0_i32 = arith.constant 0 : i32
    %c0_i32_0 = arith.constant 0 : i32
    return %arg0, %c0_i32 : i32, i32
  }
  func.func @transform_1(%arg0: i32) -> (i32, i32) {
    %c0_i32 = arith.constant 0 : i32
    %c0_i32_0 = arith.constant 0 : i32
    return %arg0, %c0_i32 : i32, i32
  }
  func.func @transform_2(%arg0: i32) -> (i32, i32) {
    %c0_i32 = arith.constant 0 : i32
    %c0_i32_0 = arith.constant 0 : i32
    %c0_i32_1 = arith.constant 0 : i32
    return %c0_i32, %c0_i32_0 : i32, i32
  }
  func.func @transform_3(%arg0: i32) -> (i32, i32) {
    %c0_i32 = arith.constant 0 : i32
    %c0_i32_0 = arith.constant 0 : i32
    %c0_i32_1 = arith.constant 0 : i32
    return %c0_i32, %c0_i32_0 : i32, i32
  }
  func.func @transform_4(%arg0: i32) -> (i32, i32) {
    %c0_i32 = arith.constant 0 : i32
    %c0_i32_0 = arith.constant 0 : i32
    %c0_i32_1 = arith.constant 0 : i32
    return %c0_i32, %c0_i32_0 : i32, i32
  }
  func.func @transform_5(%arg0: i32) -> (i32, i32) {
    %c0_i32 = arith.constant 0 : i32
    %c0_i32_0 = arith.constant 0 : i32
    %c0_i32_1 = arith.constant 0 : i32
    return %c0_i32, %c0_i32_0 : i32, i32
  }
  func.func @transform_6(%arg0: i32) -> (i32, i32) {
    %c0_i32 = arith.constant 0 : i32
    %c0_i32_0 = arith.constant 0 : i32
    %c0_i32_1 = arith.constant 0 : i32
    return %c0_i32, %c0_i32_0 : i32, i32
  }
  func.func @transform_7(%arg0: i32) -> (i32, i32) {
    %c0_i32 = arith.constant 0 : i32
    %c0_i32_0 = arith.constant 0 : i32
    %c0_i32_1 = arith.constant 0 : i32
    return %c0_i32, %c0_i32_0 : i32, i32
  }
  func.func @transform_8(%arg0: i32) -> (i32, i32) {
    %c0_i32 = arith.constant 0 : i32
    %c0_i32_0 = arith.constant 0 : i32
    %c0_i32_1 = arith.constant 0 : i32
    return %c0_i32, %c0_i32_0 : i32, i32
  }
  func.func @transform_9(%arg0: i32) -> (i32, i32) {
    %c0_i32 = arith.constant 0 : i32
    %c0_i32_0 = arith.constant 0 : i32
    %c0_i32_1 = arith.constant 0 : i32
    return %c0_i32, %c0_i32_0 : i32, i32
  }
  func.func @transform_10(%arg0: i32) -> (i32, i32) {
    %c0_i32 = arith.constant 0 : i32
    %c0_i32_0 = arith.constant 0 : i32
    %c0_i32_1 = arith.constant 0 : i32
    return %c0_i32, %c0_i32_0 : i32, i32
  }
  func.func @transform_11(%arg0: i32) -> (i32, i32) {
    %c0_i32 = arith.constant 0 : i32
    %c0_i32_0 = arith.constant 0 : i32
    return %c0_i32, %arg0 : i32, i32
  }
}

</mosaic_0001>

<bundles_post_ra>
// kernel: central_critic_forward.1
= control target key start
LH: loop header
LB: loop body
LE: loop exit
PB: predicated region body
PF: predicated region fallthrough
CT: control target
= control target key end

     0   :  { %vm141_vm0 = vcmask 1043456   ;;  %vm116_vm1 = vcmask 64512   ;;  %vm291_vm2 = vcmask 195584   ;;  %vm1185_vm3 = vmmov 0   ;;  %s1416_s2 = inlined_call_operand.vmem [shape: bf16[24,128], index: 2, kind: input, shape index: {}]   ;;  %s1417_s3 = inlined_call_operand.vmem [shape: bf16[8,128], index: 3, kind: input, shape index: {}]   ;;  %s1418_s1 = inlined_call_operand.vmem [shape: bf16[128,8], index: 1, kind: input, shape index: {}]   ;;  %s1419_s0 = inlined_call_operand.vmem [shape: bf16[128,24], index: 0, kind: input, shape index: {}]   ;;  %s1420_s5 = inlined_call_operand.vmem [shape: bf16[128,128], index: 5, kind: input, shape index: {}]   ;;  %s1421_s7 = inlined_call_operand.vmem [shape: bf16[128,128], index: 7, kind: input, shape index: {}]   ;;  %s1422_s4 = inlined_call_operand.vmem [shape: f32[1,128], index: 4, kind: input, shape index: {}]   ;;  %s1423_s6 = inlined_call_operand.vmem [shape: f32[1,128], index: 6, kind: input, shape index: {}]   ;;  %s1424_s8 = inlined_call_operand.vmem [shape: f32[1,128], index: 8, kind: input, shape index: {}]   ;;  %s1425_s9 = inlined_call_operand.vmem [shape: bf16[1,128], index: 9, kind: input, shape index: {}]   ;;  %s1426_s10 = inlined_call_operand.<no memory space> [shape: f32[1,1], index: 10, kind: input, shape index: {}]   ;;  %s1427_s11 = inlined_call_operand.vmem [shape: f32[1,128], index: 11, kind: output, shape index: {}]  }
   0x1   :  { %v1150_v0 = vld [vmem:[%s1416_s2] sm:$0xff]   ;;  %v1151_v1 = vld [vmem:[%s1416_s2 + $0x8] ss:$0 sps:$4 sm:$0xff]   ;;  %v1156_v8 = vld [vmem:[%s1418_s1 + $0x10] sm:$0xff]  }
   0x2   :  { %v75_v2 = vld [vmem:[%s1417_s3] sm:$0xf]  ;;  %1026 = vmatprep.subr.bf16.mxu0 %v1150_v0  ;;  %v1153_v5 = vld [vmem:[%s1418_s1 + $0x8] sm:$0xff]   ;;  %v317_v7 = vsel %vm141_vm0, %v1151_v1, 0  ;;  %v1157_v10 = vld [vmem:[%s1419_s0 + $0x10] sm:$0xff]  }
   0x3   :  { %1146 = vmatprep.subr.msk.bf16.mxu1 %vm141_vm0, %v75_v2  ;;  %v143_v3 = vsel %vm141_vm0, %v75_v2, 0  ;;  %v1152_v4 = vld [vmem:[%s1418_s1] sm:$0xff]   ;;  %1027 = vmatpush3.bf16.msra.mxu0 %v1150_v0  ;;  %v1155_v9 = vld [vmem:[%s1419_s0 + $0x8] sm:$0xff]   ;;  %v1158_v11 = vld [vmem:[%s1418_s1 + $0x18] sm:$0xff]  }
   0x4   :  { %1009 = vmatpush3.bf16.msra.mxu1 %v143_v3  ;;  %1010 = vmatprep.mubr.msk.bf16.mxu1 %vm116_vm1, %v1152_v4  ;;  %v1154_v6 = vld [vmem:[%s1419_s0] sm:$0xff]   ;;  %v1159_v13 = vld [vmem:[%s1419_s0 + $0x18] sm:$0xff]   ;;  %v1162_v15 = vld [vmem:[%s1418_s1 + $0x28] sm:$0xff]  }
   0x5   :  { %1147 = vmatprep.subr.msk.bf16.mxu0 %vm141_vm0, %v1151_v1  ;;  %1030 = vmatprep.mubr.msk.bf16.mxu0 %vm291_vm2, %v1154_v6  ;;  %v1160_v12 = vld [vmem:[%s1418_s1 + $0x20] sm:$0xff]   ;;  %v1164_v16 = vld [vmem:[%s1418_s1 + $0x30] sm:$0xff]   ;;  %v1169_v18 = vld [vmem:[%s1420_s5 + $0x8] sm:$0xff]  }
   0x6   :  { %v1161_v14 = vld [vmem:[%s1419_s0 + $0x20] sm:$0xff]   ;;  %v1163_v19 = vld [vmem:[%s1419_s0 + $0x28] sm:$0xff]   ;;  %v1165_v20 = vld [vmem:[%s1419_s0 + $0x30] sm:$0xff]  }
   0x7   :  { %1011 = vmatmul.mubr.msk.bf16.vlgmr.msra.gmra.mrb[0].mxu1 %vm116_vm1, %v1153_v5  ;;  %1029 = vmatpush3.bf16.msra.mxu0 %v317_v7  ;;  %v1168_v17 = vld [vmem:[%s1420_s5] sm:$0xff]   ;;  %v1170_v21 = vld [vmem:[%s1420_s5 + $0x10] sm:$0xff]   ;;  %v1166_v22 = vld [vmem:[%s1418_s1 + $0x38] sm:$0xff]  }
   0x8   :  { %1014 = vmatprep.mubr.msk.bf16.mxu1 %vm116_vm1, %v1156_v8  ;;  %1046 = vmatprep.subr.bf16.mxu1 %v1168_v17  ;;  %v1171_v23 = vld [vmem:[%s1420_s5 + $0x18] sm:$0xff]   ;;  %v1172_v24 = vld [vmem:[%s1420_s5 + $0x20] sm:$0xff]   ;;  %v1173_v26 = vld [vmem:[%s1420_s5 + $0x28] sm:$0xff]  }
   0x9   :  { %1047 = vmatpush3.bf16.msra.mxu1 %v1168_v17  ;;  %v1167_v25 = vld [vmem:[%s1419_s0 + $0x38] sm:$0xff]   ;;  %v1174_v27 = vld [vmem:[%s1420_s5 + $0x30] sm:$0xff]   ;;  %v1176_v29 = vld [vmem:[%s1421_s7] sm:$0xff]  }
   0xa   :  { %1031 = vmatmul.mubr.msk.bf16.vlgmr.msra.gmra.mrb[0].mxu0 %vm291_vm2, %v1155_v9  ;;  %1048 = vmatprep.subr.bf16.mxu1 %v1169_v18  ;;  %v1175_v28 = vld [vmem:[%s1420_s5 + $0x38] sm:$0xff]   ;;  %v1353_v35 = vld [vmem:[%s1422_s4] ss:$0 sm:$0xff]  ;;  %v1177_v2 = vld [vmem:[%s1421_s7 + $0x8] sm:$0xff]  }
   0xb   :  { %1034 = vmatprep.mubr.msk.bf16.mxu0 %vm291_vm2, %v1157_v10 }
   0xd   :  { %1049 = vmatpush3.bf16.msra.mxu1 %v1169_v18 }
   0xe   :  { %1050 = vmatprep.subr.bf16.mxu1 %v1170_v21 }
   0xf   :  { %1015 = vmatmul.mubr.msk.bf16.gmra.mrb[4].mxu1 %vm116_vm1, %v1158_v11 }
  0x10   :  { %1018 = vmatprep.mubr.msk.bf16.mxu1 %vm116_vm1, %v1160_v12 }
  0x11   :  { %1051 = vmatpush3.bf16.msra.mxu1 %v1170_v21 }
  0x12   :  { %1035 = vmatmul.mubr.msk.bf16.gmra.mrb[4].mxu0 %vm291_vm2, %v1159_v13  ;;  %1052 = vmatprep.subr.bf16.mxu1 %v1171_v23  ;;  %v1178_v13 = vld [vmem:[%s1421_s7 + $0x10] sm:$0xff]  }
  0x13   :  { %1038 = vmatprep.mubr.msk.bf16.mxu0 %vm291_vm2, %v1161_v14 }
  0x15   :  { %1053 = vmatpush3.bf16.msra.mxu1 %v1171_v23 }
  0x16   :  { %1054 = vmatprep.subr.bf16.mxu1 %v1172_v24 }
  0x17   :  { %1019 = vmatmul.mubr.msk.bf16.gmra.mrb[8].mxu1 %vm116_vm1, %v1162_v15 }
  0x18   :  { %1022 = vmatprep.mubr.msk.bf16.mxu1 %vm116_vm1, %v1164_v16 }
  0x19   :  { %1055 = vmatpush3.bf16.msra.mxu1 %v1172_v24 }
  0x1a   :  { %1039 = vmatmul.mubr.msk.bf16.gmra.mrb[8].mxu0 %vm291_vm2, %v1163_v19  ;;  %1056 = vmatprep.subr.bf16.mxu1 %v1173_v26 }
  0x1b   :  { %1042 = vmatprep.mubr.msk.bf16.mxu0 %vm291_vm2, %v1165_v20 }
  0x1d   :  { %1057 = vmatpush3.bf16.msra.mxu1 %v1173_v26  ;;  %v1179_v26 = vld [vmem:[%s1421_s7 + $0x18] sm:$0xff]  }
  0x1e   :  { %1058 = vmatprep.subr.bf16.mxu1 %v1174_v27 }
  0x1f   :  { %1023 = vmatmul.mubr.msk.bf16.gmra.mrb[12].mxu1 %vm116_vm1, %v1166_v22 }
  0x21   :  { %1059 = vmatpush3.bf16.msra.mxu1 %v1174_v27 }
  0x22   :  { %1043 = vmatmul.mubr.msk.bf16.gmra.mrb[12].mxu0 %vm291_vm2, %v1167_v25  ;;  %1060 = vmatprep.subr.bf16.mxu1 %v1175_v28 }
  0x25   :  { %1061 = vmatpush3.bf16.msra.mxu1 %v1175_v28 }
  0x26   :  { %1078 = vmatprep.subr.bf16.mxu1 %v1176_v29 }
  0xda   :  { %v1012_v30 = vpop.f32.mrb[0].mxu1 }
  0xdb   :  { %v179_v31 = vpop.f32.mrb[1].mxu1 }
  0xdc   :  { %v1013_v32 = vpop.f32.mrb[2].mxu1 }
  0xdd   :  { %v182_v33 = vpop.f32.mrb[3].mxu1  ;;  %v1032_v34 = vpop.f32.mrb[0].mxu0 }
  0xde   :  { %v362_v36 = vadd.f32 %v1032_v34, %v1012_v30  ;;  %v353_v37 = vpop.f32.mrb[1].mxu0 }
  0xdf   :  { %v354_v38 = vadd.f32 %v353_v37, %v179_v31  ;;  %v1033_v39 = vpop.f32.mrb[2].mxu0 }
  0xe0   :  { %v425_v40 = vadd.f32 %v1353_v35, %v362_v36  ;;  %v365_v41 = vadd.f32 %v1033_v39, %v1013_v32  ;;  %v356_v42 = vpop.f32.mrb[3].mxu0 }
  0xe1   :  { %v423_v44 = vadd.f32 %v1353_v35, %v354_v38  ;;  %v357_v45 = vadd.f32 %v356_v42, %v182_v33  ;;  %v1180_v38 = vld [vmem:[%s1421_s7 + $0x20] sm:$0xff]  }
  0xe2   :  { %v1016_v43 = vpop.f32.mrb[4].mxu1  ;;  %v426_v47 = vadd.f32 %v1353_v35, %v365_v41  ;;  %v441_v51 = vmax.f32 %v425_v40, 0.0 }
  0xe3   :  { %v195_v46 = vpop.f32.mrb[5].mxu1  ;;  %v424_v49 = vadd.f32 %v1353_v35, %v357_v45  ;;  %v439_v53 = vmax.f32 %v423_v44, 0.0 }
  0xe4   :  { %v1017_v48 = vpop.f32.mrb[6].mxu1  ;;  %v442_v52 = vmax.f32 %v426_v47, 0.0 }
  0xe5   :  { %v198_v50 = vpop.f32.mrb[7].mxu1  ;;  %v440_v54 = vmax.f32 %v424_v49, 0.0  ;;  %v1036_v55 = vpop.f32.mrb[4].mxu0 }
  0xe6   :  { %v456_v56 = vpack.c.bf16 %v442_v52, %v441_v51  ;;  %v378_v57 = vadd.f32 %v1036_v55, %v1016_v43  ;;  %v369_v58 = vpop.f32.mrb[5].mxu0 }
  0xe7   :  { %v370_v59 = vadd.f32 %v369_v58, %v195_v46  ;;  %v1037_v60 = vpop.f32.mrb[6].mxu0  ;;  %v455_v61 = vpack.c.bf16 %v440_v54, %v439_v53 }
  0xe8   :  { %v429_v62 = vadd.f32 %v1353_v35, %v378_v57  ;;  %v381_v63 = vadd.f32 %v1037_v60, %v1017_v48  ;;  %v372_v0 = vpop.f32.mrb[7].mxu0 }
  0xe9   :  { %v427_v3 = vadd.f32 %v1353_v35, %v370_v59  ;;  %v373_v4 = vadd.f32 %v372_v0, %v198_v50  ;;  %1062 = vmatprep.mubr.bf16.mxu1 %v455_v61  ;;  %v1181_v50 = vld [vmem:[%s1421_s7 + $0x28] sm:$0xff]   ;;  %v1182_v61 = vld [vmem:[%s1421_s7 + $0x30] sm:$0xff]  }
  0xea   :  { %v1020_v1 = vpop.f32.mrb[8].mxu1  ;;  %v445_v6 = vmax.f32 %v429_v62, 0.0  ;;  %v430_v7 = vadd.f32 %v1353_v35, %v381_v63  ;;  %1063 = vmatmul.mubr.bf16.vlgmr.msra.gmra.mrb[16].mxu1 %v456_v56  ;;  %v1183_v62 = vld [vmem:[%s1421_s7 + $0x38] sm:$0xff]  }
  0xeb   :  { %v211_v5 = vpop.f32.mrb[9].mxu1  ;;  %v443_v9 = vmax.f32 %v427_v3, 0.0  ;;  %v428_v10 = vadd.f32 %v1353_v35, %v373_v4  ;;  %1079 = vmatpush3.bf16.msra.mxu1 %v1176_v29 }
  0xec   :  { %v1021_v8 = vpop.f32.mrb[10].mxu1  ;;  %v446_v12 = vmax.f32 %v430_v7, 0.0  ;;  %1080 = vmatprep.subr.bf16.mxu1 %v1177_v2 }
  0xed   :  { %v214_v11 = vpop.f32.mrb[11].mxu1  ;;  %v444_v14 = vmax.f32 %v428_v10, 0.0  ;;  %v1040_v15 = vpop.f32.mrb[8].mxu0 }
  0xee   :  { %v394_v16 = vadd.f32 %v1040_v15, %v1020_v1  ;;  %v458_v17 = vpack.c.bf16 %v446_v12, %v445_v6  ;;  %v385_v18 = vpop.f32.mrb[9].mxu0 }
  0xef   :  { %v457_v19 = vpack.c.bf16 %v444_v14, %v443_v9  ;;  %v386_v20 = vadd.f32 %v385_v18, %v211_v5  ;;  %v1041_v21 = vpop.f32.mrb[10].mxu0  ;;  %1081 = vmatpush3.bf16.msra.mxu1 %v1177_v2 }
  0xf0   :  { %v433_v22 = vadd.f32 %v1353_v35, %v394_v16  ;;  %v397_v23 = vadd.f32 %v1041_v21, %v1021_v8  ;;  %v388_v24 = vpop.f32.mrb[11].mxu0  ;;  %1082 = vmatprep.subr.bf16.mxu1 %v1178_v13 }
  0xf1   :  { %1066 = vmatprep.mubr.bf16.mxu1 %v457_v19  ;;  %v431_v27 = vadd.f32 %v1353_v35, %v386_v20  ;;  %v389_v28 = vadd.f32 %v388_v24, %v214_v11 }
  0xf2   :  { %v1024_v25 = vpop.f32.mrb[12].mxu1  ;;  %v449_v30 = vmax.f32 %v433_v22, 0.0  ;;  %1067 = vmatmul.mubr.bf16.gmra.mrb[20].mxu1 %v458_v17  ;;  %v434_v31 = vadd.f32 %v1353_v35, %v397_v23 }
  0xf3   :  { %v227_v29 = vpop.f32.mrb[13].mxu1  ;;  %v447_v33 = vmax.f32 %v431_v27, 0.0  ;;  %v432_v34 = vadd.f32 %v1353_v35, %v389_v28  ;;  %1083 = vmatpush3.bf16.msra.mxu1 %v1178_v13 }
  0xf4   :  { %v1025_v32 = vpop.f32.mrb[14].mxu1  ;;  %v450_v37 = vmax.f32 %v434_v31, 0.0  ;;  %1084 = vmatprep.subr.bf16.mxu1 %v1179_v26 }
  0xf5   :  { %v230_v36 = vpop.f32.mrb[15].mxu1  ;;  %v448_v39 = vmax.f32 %v432_v34, 0.0  ;;  %v1044_v40 = vpop.f32.mrb[12].mxu0 }
  0xf6   :  { %v460_v41 = vpack.c.bf16 %v450_v37, %v449_v30  ;;  %v410_v42 = vadd.f32 %v1044_v40, %v1024_v25  ;;  %v401_v43 = vpop.f32.mrb[13].mxu0 }
  0xf7   :  { %v459_v44 = vpack.c.bf16 %v448_v39, %v447_v33  ;;  %v402_v45 = vadd.f32 %v401_v43, %v227_v29  ;;  %v1045_v46 = vpop.f32.mrb[14].mxu0  ;;  %1085 = vmatpush3.bf16.msra.mxu1 %v1179_v26 }
  0xf8   :  { %v437_v47 = vadd.f32 %v1353_v35, %v410_v42  ;;  %v413_v48 = vadd.f32 %v1045_v46, %v1025_v32  ;;  %v404_v49 = vpop.f32.mrb[15].mxu0  ;;  %1086 = vmatprep.subr.bf16.mxu1 %v1180_v38 }
  0xf9   :  { %1070 = vmatprep.mubr.bf16.mxu1 %v459_v44  ;;  %v435_v51 = vadd.f32 %v1353_v35, %v402_v45  ;;  %v405_v52 = vadd.f32 %v404_v49, %v230_v36 }
  0xfa   :  { %1071 = vmatmul.mubr.bf16.gmra.mrb[24].mxu1 %v460_v41  ;;  %v453_v53 = vmax.f32 %v437_v47, 0.0  ;;  %v438_v54 = vadd.f32 %v1353_v35, %v413_v48 }
  0xfb   :  { %v451_v55 = vmax.f32 %v435_v51, 0.0  ;;  %v436_v56 = vadd.f32 %v1353_v35, %v405_v52  ;;  %1087 = vmatpush3.bf16.msra.mxu1 %v1180_v38  ;;  %v930_v35 = vld [vmem:[%s1423_s6] ss:$0 sm:$0xff] }
  0xfc   :  { %v454_v57 = vmax.f32 %v438_v54, 0.0  ;;  %1088 = vmatprep.subr.bf16.mxu1 %v1181_v50 }
  0xfd   :  { %v452_v58 = vmax.f32 %v436_v56, 0.0  ;;  %v1184_v56 = vmov 0.0  }
  0xfe   :  { %v462_v59 = vpack.c.bf16 %v454_v57, %v453_v53  ;;  %1110 = vmatprep.subr.bf16.mxu0 %v1184_v56  ;;  %1126 = vmatprep.mubr.msk.bf16.mxu0 %vm1185_vm3, %v1184_v56  ;;  %v939_v57 = vld [vmem:[%s1424_s8] ss:$0 sm:$0xff] }
  0xff   :  { %v461_v60 = vpack.c.bf16 %v452_v58, %v451_v55  ;;  %1089 = vmatpush3.bf16.msra.mxu1 %v1181_v50 }
 0x100   :  { %1090 = vmatprep.subr.bf16.mxu1 %v1182_v61 }
 0x101   :  { %1074 = vmatprep.mubr.bf16.mxu1 %v461_v60 }
 0x102   :  { %1075 = vmatmul.mubr.bf16.gmra.mrb[28].mxu1 %v462_v59 }
 0x103   :  { %1091 = vmatpush3.bf16.msra.mxu1 %v1182_v61 }
 0x104   :  { %1092 = vmatprep.subr.bf16.mxu1 %v1183_v62 }
 0x107   :  { %1093 = vmatpush3.bf16.msra.mxu1 %v1183_v62 }
 0x1bd   :  { %v1064_v63 = vpop.f32.mrb[16].mxu1 }
 0x1be   :  { %v577_v0 = vadd.f32 %v1064_v63, %v930_v35  ;;  %v568_v1 = vpop.f32.mrb[17].mxu1 }
 0x1bf   :  { %v569_v2 = vadd.f32 %v930_v35, %v568_v1  ;;  %v1065_v3 = vpop.f32.mrb[18].mxu1 }
 0x1c0   :  { %v580_v4 = vadd.f32 %v1065_v3, %v930_v35  ;;  %v571_v5 = vpop.f32.mrb[19].mxu1  ;;  %v633_v7 = vmax.f32 %v577_v0, 0.0 }
 0x1c1   :  { %v572_v6 = vadd.f32 %v930_v35, %v571_v5  ;;  %v631_v9 = vmax.f32 %v569_v2, 0.0 }
 0x1c2   :  { %v634_v8 = vmax.f32 %v580_v4, 0.0 }
 0x1c3   :  { %v632_v10 = vmax.f32 %v572_v6, 0.0 }
 0x1c4   :  { %v648_v11 = vpack.c.bf16 %v634_v8, %v633_v7 }
 0x1c5   :  { %v647_v12 = vpack.c.bf16 %v632_v10, %v631_v9  ;;  %v1068_v13 = vpop.f32.mrb[20].mxu1 }
 0x1c6   :  { %v593_v14 = vadd.f32 %v1068_v13, %v930_v35  ;;  %v584_v15 = vpop.f32.mrb[21].mxu1 }
 0x1c7   :  { %v585_v16 = vadd.f32 %v930_v35, %v584_v15  ;;  %v1069_v17 = vpop.f32.mrb[22].mxu1  ;;  %1094 = vmatprep.mubr.bf16.mxu1 %v647_v12 }
 0x1c8   :  { %v637_v18 = vmax.f32 %v593_v14, 0.0  ;;  %v596_v19 = vadd.f32 %v1069_v17, %v930_v35  ;;  %v587_v20 = vpop.f32.mrb[23].mxu1  ;;  %1095 = vmatmul.mubr.bf16.vlgmr.msra.gmra.mrb[32].mxu1 %v648_v11 }
 0x1c9   :  { %v635_v21 = vmax.f32 %v585_v16, 0.0  ;;  %v588_v22 = vadd.f32 %v930_v35, %v587_v20 }
 0x1ca   :  { %v638_v23 = vmax.f32 %v596_v19, 0.0 }
 0x1cb   :  { %v636_v24 = vmax.f32 %v588_v22, 0.0 }
 0x1cc   :  { %v650_v25 = vpack.c.bf16 %v638_v23, %v637_v18 }
 0x1cd   :  { %v649_v26 = vpack.c.bf16 %v636_v24, %v635_v21  ;;  %v1072_v27 = vpop.f32.mrb[24].mxu1 }
 0x1ce   :  { %v609_v28 = vadd.f32 %v1072_v27, %v930_v35  ;;  %v600_v29 = vpop.f32.mrb[25].mxu1 }
 0x1cf   :  { %1098 = vmatprep.mubr.bf16.mxu1 %v649_v26  ;;  %v601_v30 = vadd.f32 %v930_v35, %v600_v29  ;;  %v1073_v31 = vpop.f32.mrb[26].mxu1 }
 0x1d0   :  { %1099 = vmatmul.mubr.bf16.gmra.mrb[36].mxu1 %v650_v25  ;;  %v641_v32 = vmax.f32 %v609_v28, 0.0  ;;  %v612_v33 = vadd.f32 %v1073_v31, %v930_v35  ;;  %v603_v34 = vpop.f32.mrb[27].mxu1 }
 0x1d1   :  { %v639_v36 = vmax.f32 %v601_v30, 0.0  ;;  %v604_v37 = vadd.f32 %v930_v35, %v603_v34 }
 0x1d2   :  { %v642_v38 = vmax.f32 %v612_v33, 0.0 }
 0x1d3   :  { %v640_v39 = vmax.f32 %v604_v37, 0.0 }
 0x1d4   :  { %v652_v40 = vpack.c.bf16 %v642_v38, %v641_v32 }
 0x1d5   :  { %v651_v41 = vpack.c.bf16 %v640_v39, %v639_v36  ;;  %v1076_v42 = vpop.f32.mrb[28].mxu1 }
 0x1d6   :  { %v625_v43 = vadd.f32 %v1076_v42, %v930_v35  ;;  %v616_v44 = vpop.f32.mrb[29].mxu1 }
 0x1d7   :  { %1102 = vmatprep.mubr.bf16.mxu1 %v651_v41  ;;  %v617_v45 = vadd.f32 %v930_v35, %v616_v44  ;;  %v1077_v46 = vpop.f32.mrb[30].mxu1 }
 0x1d8   :  { %1103 = vmatmul.mubr.bf16.gmra.mrb[40].mxu1 %v652_v40  ;;  %v645_v47 = vmax.f32 %v625_v43, 0.0  ;;  %v628_v48 = vadd.f32 %v1077_v46, %v930_v35  ;;  %v619_v49 = vpop.f32.mrb[31].mxu1 }
 0x1d9   :  { %v643_v50 = vmax.f32 %v617_v45, 0.0  ;;  %v620_v51 = vadd.f32 %v930_v35, %v619_v49 }
 0x1da   :  { %v646_v52 = vmax.f32 %v628_v48, 0.0 }
 0x1db   :  { %v644_v53 = vmax.f32 %v620_v51, 0.0  ;;  %v849_v51 = vstv %s1426_s10 }
 0x1dc   :  { %v654_v54 = vpack.c.bf16 %v646_v52, %v645_v47 }
 0x1dd   :  { %v653_v55 = vpack.c.bf16 %v644_v53, %v643_v50  ;;  %v847_v50 = vld [vmem:[%s1425_s9] sm:$0x1] }
 0x1df   :  { %1106 = vmatprep.mubr.bf16.mxu1 %v653_v55 }
 0x1e0   :  { %1107 = vmatmul.mubr.bf16.gmra.mrb[44].mxu1 %v654_v54 }
 0x29b   :  { %v1096_v58 = vpop.f32.mrb[32].mxu1 }
 0x29c   :  { %v769_v59 = vadd.f32 %v1096_v58, %v939_v57  ;;  %v760_v60 = vpop.f32.mrb[33].mxu1 }
 0x29d   :  { %v761_v61 = vadd.f32 %v939_v57, %v760_v60  ;;  %v1097_v62 = vpop.f32.mrb[34].mxu1 }
 0x29e   :  { %v772_v35 = vadd.f32 %v1097_v62, %v939_v57  ;;  %v763_v63 = vpop.f32.mrb[35].mxu1  ;;  %v825_v1 = vmax.f32 %v769_v59, 0.0 }
 0x29f   :  { %v764_v0 = vadd.f32 %v939_v57, %v763_v63  ;;  %v823_v3 = vmax.f32 %v761_v61, 0.0 }
 0x2a0   :  { %v826_v2 = vmax.f32 %v772_v35, 0.0 }
 0x2a1   :  { %v824_v4 = vmax.f32 %v764_v0, 0.0 }
 0x2a2   :  { %v840_v5 = vpack.c.bf16 %v826_v2, %v825_v1 }
 0x2a3   :  { %v839_v6 = vpack.c.bf16 %v824_v4, %v823_v3  ;;  %v1100_v7 = vpop.f32.mrb[36].mxu1 }
 0x2a4   :  { %v785_v8 = vadd.f32 %v1100_v7, %v939_v57  ;;  %v776_v9 = vpop.f32.mrb[37].mxu1 }
 0x2a5   :  { %v777_v10 = vadd.f32 %v939_v57, %v776_v9  ;;  %v1101_v11 = vpop.f32.mrb[38].mxu1  ;;  %1111 = vmatpush3.bf16.xpose.msra.mxu0 %v839_v6 }
 0x2a6   :  { %v788_v12 = vadd.f32 %v1101_v11, %v939_v57  ;;  %v779_v13 = vpop.f32.mrb[39].mxu1  ;;  %1112 = vmatprep.subr.bf16.mxu0 %v1184_v56  ;;  %v829_v15 = vmax.f32 %v785_v8, 0.0 }
 0x2a7   :  { %v780_v14 = vadd.f32 %v939_v57, %v779_v13  ;;  %v827_v17 = vmax.f32 %v777_v10, 0.0 }
 0x2a8   :  { %v830_v16 = vmax.f32 %v788_v12, 0.0 }
 0x2a9   :  { %v828_v18 = vmax.f32 %v780_v14, 0.0 }
 0x2aa   :  { %v842_v19 = vpack.c.bf16 %v830_v16, %v829_v15 }
 0x2ab   :  { %v841_v20 = vpack.c.bf16 %v828_v18, %v827_v17  ;;  %v1104_v21 = vpop.f32.mrb[40].mxu1 }
 0x2ac   :  { %v801_v22 = vadd.f32 %v1104_v21, %v939_v57  ;;  %v792_v23 = vpop.f32.mrb[41].mxu1 }
 0x2ad   :  { %1113 = vmatpush3.bf16.xpose.msra.mxu0 %v840_v5  ;;  %v793_v24 = vadd.f32 %v939_v57, %v792_v23  ;;  %v1105_v25 = vpop.f32.mrb[42].mxu1 }
 0x2ae   :  { %v833_v26 = vmax.f32 %v801_v22, 0.0  ;;  %v804_v27 = vadd.f32 %v1105_v25, %v939_v57  ;;  %v795_v28 = vpop.f32.mrb[43].mxu1  ;;  %1114 = vmatprep.subr.bf16.mxu0 %v1184_v56 }
 0x2af   :  { %v831_v29 = vmax.f32 %v793_v24, 0.0  ;;  %v796_v30 = vadd.f32 %v939_v57, %v795_v28 }
 0x2b0   :  { %v834_v31 = vmax.f32 %v804_v27, 0.0 }
 0x2b1   :  { %v832_v32 = vmax.f32 %v796_v30, 0.0 }
 0x2b2   :  { %v844_v33 = vpack.c.bf16 %v834_v31, %v833_v26 }
 0x2b3   :  { %v843_v34 = vpack.c.bf16 %v832_v32, %v831_v29  ;;  %v1108_v36 = vpop.f32.mrb[44].mxu1 }
 0x2b4   :  { %v817_v37 = vadd.f32 %v1108_v36, %v939_v57  ;;  %v808_v38 = vpop.f32.mrb[45].mxu1 }
 0x2b5   :  { %1115 = vmatpush3.bf16.xpose.msra.mxu0 %v841_v20  ;;  %v809_v39 = vadd.f32 %v939_v57, %v808_v38  ;;  %v1109_v40 = vpop.f32.mrb[46].mxu1 }
 0x2b6   :  { %1116 = vmatprep.subr.bf16.mxu0 %v1184_v56  ;;  %v837_v41 = vmax.f32 %v817_v37, 0.0  ;;  %v820_v42 = vadd.f32 %v1109_v40, %v939_v57  ;;  %v811_v43 = vpop.f32.mrb[47].mxu1 }
 0x2b7   :  { %v835_v44 = vmax.f32 %v809_v39, 0.0  ;;  %v812_v45 = vadd.f32 %v939_v57, %v811_v43 }
 0x2b8   :  { %v838_v46 = vmax.f32 %v820_v42, 0.0 }
 0x2b9   :  { %v836_v47 = vmax.f32 %v812_v45, 0.0 }
 0x2ba   :  { %v846_v48 = vpack.c.bf16 %v838_v46, %v837_v41 }
 0x2bb   :  { %v845_v49 = vpack.c.bf16 %v836_v47, %v835_v44 }
 0x2bd   :  { %1117 = vmatpush3.bf16.xpose.msra.mxu0 %v842_v19 }
 0x2be   :  { %1118 = vmatprep.subr.bf16.mxu0 %v1184_v56 }
 0x2c5   :  { %1119 = vmatpush3.bf16.xpose.msra.mxu0 %v843_v34 }
 0x2c6   :  { %1120 = vmatprep.subr.bf16.mxu0 %v1184_v56 }
 0x2cd   :  { %1121 = vmatpush3.bf16.xpose.msra.mxu0 %v844_v33 }
 0x2ce   :  { %1122 = vmatprep.subr.bf16.mxu0 %v1184_v56 }
 0x2d5   :  { %1123 = vmatpush3.bf16.xpose.msra.mxu0 %v845_v49 }
 0x2d6   :  { %1124 = vmatprep.subr.bf16.mxu0 %v1184_v56 }
 0x2dd   :  { %1125 = vmatpush3.bf16.xpose.msra.mxu0 %v846_v48 }
 0x2e4   :  { %1127 = vmatmul.mubr.bf16.vlgmr.msra.gmra.mrb[16].mxu0 %v847_v50 }
 0x3b7   :  { %v884_v52 = vpop.f32.mrb[16].mxu0 }
 0x3b8   :  { %v885_v53 = vadd.f32 %v884_v52, %v849_v51  ;;  %v1128_v54 = vpop.f32.mrb[17].mxu0 }
 0x3b9   :  { %v887_v55 = vpop.f32.mrb[18].mxu0 }
 0x3ba   :  { %890 = vst [vmem:[%s1427_s11] sm:$0x1] %v885_v53  ;;  %v1129_v57 = vpop.f32.mrb[19].mxu0 }

</bundles_post_ra>
